<compile_context>
chip_gen: v5e
topology: v5e:2x2
jax: 0.10.0
libtpu: 0.0.40
codegen_flags: <defaults>
</compile_context>

<pallas_src>
import functools

import jax
import jax.numpy as jnp
from jax import lax
from jax.experimental import pallas as pl
from jax.experimental.pallas import tpu as pltpu


def _proj_norm_kernel(x_ref, w_ref, b_ref, g_ref, beta_ref, o_ref, *,
                      tokens_per_block, c, eps):
    """One grid step = one column block (tokens_per_block whole context tokens).

    x_ref:    (N_pad, D_in)       flattened image embeds (resident, constant map)
    w_ref:    (D_in, block_c)     column slice of the fused projection weight
    b_ref:    (1, block_c)        matching slice of the projection bias
    g_ref:    (1, C)              LayerNorm gamma
    beta_ref: (1, C)              LayerNorm beta
    o_ref:    (N_pad, block_c)    lane-dense output slice
    """
    # Matmul in the storage dtype (x was cast to match bf16 weights in the
    # wrapper) -> no implicit f32 promotion of the big weight tile in VMEM.
    # MXU accumulates in f32.
    y = jnp.dot(x_ref[...], w_ref[...], preferred_element_type=jnp.float32)
    y = y + b_ref[...].astype(jnp.float32)

    n_rows = y.shape[0]
    # Hoist gamma/beta broadcasts out of the unrolled per-token loop
    # (JAX does not CSE broadcast_in_dim).
    g_b = jnp.broadcast_to(g_ref[...].astype(jnp.float32), (n_rows, c))
    beta_b = jnp.broadcast_to(beta_ref[...].astype(jnp.float32), (n_rows, c))

    # LayerNorm per token: static unrolled loop over 128-aligned C-wide slabs.
    for j in range(tokens_per_block):
        lo = j * c
        y_tok = y[:, lo:lo + c]
        mean = jnp.mean(y_tok, axis=-1, keepdims=True)
        centered = y_tok - mean
        var = jnp.mean(centered * centered, axis=-1, keepdims=True)
        inv = lax.rsqrt(var + eps)
        o_ref[:, lo:lo + c] = (centered * inv * g_b + beta_b).astype(o_ref.dtype)


def image_proj_model_forward(image_embeds, params, *, clip_extra_context_tokens,
                             cross_attention_dim, eps=1e-5,
                             vmem_budget_bytes=40 * (1 << 20)):
    """image_embeds: (bsz, max_num_ips, D_in) -> (bsz*max_num_ips, T, C)."""
    bsz, max_num_ips, d_in = image_embeds.shape
    n = bsz * max_num_ips
    t = clip_extra_context_tokens
    c = cross_attention_dim
    d_out = t * c

    w = params["proj_w"]                       # (D_in, T*C), f32 or bf16
    b = params["proj_b"].reshape(1, d_out)     # (1, T*C) lane-dense
    gamma = params["norm_g"].reshape(1, c)     # (1, C)
    beta = params["norm_b"].reshape(1, c)      # (1, C)

    x = image_embeds.reshape(n, d_in)
    # bf16 weights: cast the tiny activation matrix down once so the MXU eats
    # bf16 x bf16 (f32 accumulation) without promoting the weight tile.
    if jnp.dtype(w.dtype).itemsize < jnp.dtype(x.dtype).itemsize:
        x = x.astype(w.dtype)

    out_dtype = image_embeds.dtype
    w_itemsize = jnp.dtype(w.dtype).itemsize
    x_itemsize = jnp.dtype(x.dtype).itemsize
    out_itemsize = jnp.dtype(out_dtype).itemsize

    # Pad the (tiny) row dim to a sublane multiple -> full, unmasked vregs.
    min_itemsize = min(x_itemsize, out_itemsize)
    sub = {4: 8, 2: 16, 1: 32}.get(min_itemsize, 8)
    n_pad = ((n + sub - 1) // sub) * sub
    if n_pad != n:
        x = jnp.pad(x, ((0, n_pad - n), (0, 0)))

    # ---- column-block (tokens_per_block) selection -------------------------
    def footprint(tpb):
        bc = tpb * c
        return (2 * d_in * bc * w_itemsize          # double-buffered weight tile
                + 2 * n_pad * d_in * x_itemsize     # resident activations (2x budget)
                + 2 * bc * w_itemsize               # bias slice
                + 2 * n_pad * bc * out_itemsize     # double-buffered output tile
                + 2 * n_pad * bc * 4)               # f32 y + LayerNorm temporaries

    divisors = [d for d in range(1, t + 1) if t % d == 0]
    cands = [d for d in divisors if footprint(d) <= vmem_budget_bytes] or [1]
    # Prefer >= 2 column blocks: on v7x the "parallel" grid axis lets the two
    # TensorCores each stream half of the dominant weight read.
    multi = [d for d in cands if t // d >= 2]
    if multi:
        cands = multi
    # Keep >= ~1 KiB contiguous per weight row for DMA efficiency if possible.
    dense = [d for d in cands if d * c * w_itemsize >= 1024]
    if dense:
        cands = dense
    tokens_per_block = max(cands)
    block_c = tokens_per_block * c
    num_blocks = d_out // block_c

    # Explicit VMEM limit: enough for the chosen footprint + headroom, capped
    # so it is valid on every generation (v7x has only 64 MiB physical/TC).
    vmem_limit = int(min(48 * (1 << 20),
                         max(footprint(tokens_per_block) + (4 << 20), 16 << 20)))

    cost = pl.CostEstimate(
        flops=2 * n_pad * d_in * d_out,
        transcendentals=n_pad * t,                     # one rsqrt per token
        bytes_accessed=(w.size * w_itemsize
                        + x.size * x_itemsize
                        + b.size * jnp.dtype(b.dtype).itemsize
                        + gamma.size * jnp.dtype(gamma.dtype).itemsize
                        + beta.size * jnp.dtype(beta.dtype).itemsize
                        + n_pad * d_out * out_itemsize))

    kernel = functools.partial(_proj_norm_kernel,
                               tokens_per_block=tokens_per_block, c=c, eps=eps)

    out2d = pl.pallas_call(
        kernel,
        out_shape=jax.ShapeDtypeStruct((n_pad, d_out), out_dtype),
        grid_spec=pltpu.PrefetchScalarGridSpec(
            num_scalar_prefetch=0,
            grid=(num_blocks,),
            in_specs=[
                pl.BlockSpec((n_pad, d_in), lambda i: (0, 0)),        # x: resident
                pl.BlockSpec((d_in, block_c), lambda i: (0, i)),      # weight col block
                pl.BlockSpec((1, block_c), lambda i: (0, i)),         # bias col block
                pl.BlockSpec((1, c), lambda i: (0, 0)),               # gamma
                pl.BlockSpec((1, c), lambda i: (0, 0)),               # beta
            ],
            out_specs=pl.BlockSpec((n_pad, block_c), lambda i: (0, i)),
        ),
        compiler_params=pltpu.CompilerParams(
            dimension_semantics=("parallel",),   # independent column blocks
            vmem_limit_bytes=vmem_limit),
        cost_estimate=cost,
    )(x, w, b, gamma, beta)

    # Drop row padding, free metadata reshape to (N, T, C).
    return out2d[:n].reshape(n, t, c)


def init_params(key, clip_embeddings_dim, cross_attention_dim,
                clip_extra_context_tokens, dtype=jnp.float32):
    """dtype=jnp.bfloat16 halves the dominant HBM weight stream."""
    d_out = clip_extra_context_tokens * cross_attention_dim
    k_w, k_b = jax.random.split(key)
    bound = 1.0 / float(jnp.sqrt(jnp.float32(clip_embeddings_dim)))
    proj_w = jax.random.uniform(k_w, (clip_embeddings_dim, d_out), dtype,
                                minval=-bound, maxval=bound)
    proj_b = jax.random.uniform(k_b, (d_out,), dtype, minval=-bound, maxval=bound)
    norm_g = jnp.ones((cross_attention_dim,), dtype)
    norm_b = jnp.zeros((cross_attention_dim,), dtype)
    return {"proj_w": proj_w, "proj_b": proj_b, "norm_g": norm_g, "norm_b": norm_b}


def _reference(image_embeds, params, *, clip_extra_context_tokens,
               cross_attention_dim, eps=1e-5):
    bsz, m, d_in = image_embeds.shape
    x = image_embeds.reshape(bsz * m, d_in).astype(jnp.float32)
    y = x @ params["proj_w"].astype(jnp.float32) + params["proj_b"].astype(jnp.float32)
    y = y.reshape(-1, clip_extra_context_tokens, cross_attention_dim)
    mean = y.mean(-1, keepdims=True)
    var = ((y - mean) ** 2).mean(-1, keepdims=True)
    y = (y - mean) * lax.rsqrt(var + eps)
    return y * params["norm_g"].astype(jnp.float32) + params["norm_b"].astype(jnp.float32)


if __name__ == "__main__":
    # Small shapes consistent with the module's forward.
    bsz, max_num_ips = 2, 2
    clip_embeddings_dim = 256
    cross_attention_dim = 128
    clip_extra_context_tokens = 4

    key = jax.random.PRNGKey(0)
    k_p, k_x = jax.random.split(key)
    params = init_params(k_p, clip_embeddings_dim, cross_attention_dim,
                         clip_extra_context_tokens, dtype=jnp.float32)
    image_embeds = jax.random.normal(
        k_x, (bsz, max_num_ips, clip_embeddings_dim), jnp.float32)

    # --- f32 path ---
    out = image_proj_model_forward(
        image_embeds, params,
        clip_extra_context_tokens=clip_extra_context_tokens,
        cross_attention_dim=cross_attention_dim)
    out = jax.block_until_ready(out)

    ref = _reference(image_embeds, params,
                     clip_extra_context_tokens=clip_extra_context_tokens,
                     cross_attention_dim=cross_attention_dim)
    assert out.shape == (bsz * max_num_ips, clip_extra_context_tokens,
                         cross_attention_dim)
    assert jnp.allclose(out, ref.astype(out.dtype), atol=2e-5, rtol=1e-5)

    # --- bf16 path (halved HBM weight stream; bf16 x bf16 MXU, f32 stats) ---
    params_bf16 = jax.tree_util.tree_map(lambda a: a.astype(jnp.bfloat16), params)
    image_embeds_bf16 = image_embeds.astype(jnp.bfloat16)
    out_bf16 = image_proj_model_forward(
        image_embeds_bf16, params_bf16,
        clip_extra_context_tokens=clip_extra_context_tokens,
        cross_attention_dim=cross_attention_dim)
    out_bf16 = jax.block_until_ready(out_bf16)

    ref_bf16 = _reference(image_embeds_bf16, params_bf16,
                          clip_extra_context_tokens=clip_extra_context_tokens,
                          cross_attention_dim=cross_attention_dim)
    assert out_bf16.dtype == jnp.bfloat16
    assert jnp.allclose(out_bf16.astype(jnp.float32), ref_bf16,
                        atol=2e-2, rtol=2e-2)

    print("KERNEL_OK")
</pallas_src>

<mosaic_0001>
module attributes {stable_mosaic.version = 11 : i64} {
  func.func @_proj_norm_kernel(%arg0: i32, %arg1: memref<8x256xf32, #tpu.memory_space<vmem>>, %arg2: memref<256x256xf32, #tpu.memory_space<vmem>>, %arg3: memref<1x256xf32, #tpu.memory_space<vmem>>, %arg4: memref<1x128xf32, #tpu.memory_space<vmem>>, %arg5: memref<1x128xf32, #tpu.memory_space<vmem>>, %arg6: memref<8x256xf32, #tpu.memory_space<vmem>>) attributes {dimension_semantics = [#tpu.dimension_semantics<parallel>], iteration_bounds = array<i64: 2>, scalar_prefetch = 0 : i64, scratch_operands = 0 : i64, tpu.core_type = #tpu.core_type<tc>, window_params = [{pipeline_mode = #tpu.pipeline_mode<synchronous>, transform_indices = @transform_0, window_bounds = array<i64: 8, 256>}, {transform_indices = @transform_1, window_bounds = array<i64: 256, 256>}, {transform_indices = @transform_2, window_bounds = array<i64: 1, 256>}, {pipeline_mode = #tpu.pipeline_mode<synchronous>, transform_indices = @transform_3, window_bounds = array<i64: 1, 128>}, {pipeline_mode = #tpu.pipeline_mode<synchronous>, transform_indices = @transform_4, window_bounds = array<i64: 1, 128>}, {transform_indices = @transform_5, window_bounds = array<i64: 8, 256>}]} {
    %c0 = arith.constant 0 : index
    %c0_0 = arith.constant 0 : index
    %0 = vector.load %arg1[%c0, %c0_0] : memref<8x256xf32, #tpu.memory_space<vmem>>, vector<8x256xf32>
    %c0_1 = arith.constant 0 : index
    %c0_2 = arith.constant 0 : index
    %1 = vector.load %arg2[%c0_1, %c0_2] : memref<256x256xf32, #tpu.memory_space<vmem>>, vector<256x256xf32>
    %cst = arith.constant dense<0.000000e+00> : vector<8x256xf32>
    %2 = tpu.matmul %0, %1, %cst {dimension_numbers = #tpu.dot_dimension_numbers<[1], [0], [0], [1], [0, 0, 1, 1], [], []>} : vector<8x256xf32>, vector<256x256xf32>, vector<8x256xf32> -> vector<8x256xf32>
    %c0_3 = arith.constant 0 : index
    %c0_4 = arith.constant 0 : index
    %3 = vector.load %arg3[%c0_3, %c0_4] : memref<1x256xf32, #tpu.memory_space<vmem>>, vector<1x256xf32>
    %4 = vector.broadcast %3 : vector<1x256xf32> to vector<8x256xf32>
    %5 = arith.addf %2, %4 : vector<8x256xf32>
    %c0_5 = arith.constant 0 : index
    %c0_6 = arith.constant 0 : index
    %6 = vector.load %arg4[%c0_5, %c0_6] : memref<1x128xf32, #tpu.memory_space<vmem>>, vector<1x128xf32>
    %7 = vector.shape_cast %6 : vector<1x128xf32> to vector<1x128xf32>
    %8 = vector.broadcast %7 : vector<1x128xf32> to vector<8x128xf32>
    %c0_7 = arith.constant 0 : index
    %c0_8 = arith.constant 0 : index
    %9 = vector.load %arg5[%c0_7, %c0_8] : memref<1x128xf32, #tpu.memory_space<vmem>>, vector<1x128xf32>
    %10 = vector.shape_cast %9 : vector<1x128xf32> to vector<1x128xf32>
    %11 = vector.broadcast %10 : vector<1x128xf32> to vector<8x128xf32>
    %12 = vector.extract_strided_slice %5 {offsets = [0, 0], sizes = [8, 128], strides = [1, 1]} : vector<8x256xf32> to vector<8x128xf32>
    %cst_9 = arith.constant dense<0.000000e+00> : vector<8xf32>
    %13 = vector.multi_reduction <add>, %12, %cst_9 [1] : vector<8x128xf32> to vector<8xf32>
    %14 = vector.shape_cast %13 : vector<8xf32> to vector<8x1xf32>
    %cst_10 = arith.constant 1.280000e+02 : f32
    %15 = vector.broadcast %cst_10 : f32 to vector<8x1xf32>
    %16 = arith.divf %14, %15 : vector<8x1xf32>
    %17 = vector.broadcast %16 : vector<8x1xf32> to vector<8x128xf32>
    %18 = arith.subf %12, %17 : vector<8x128xf32>
    %19 = arith.mulf %18, %18 : vector<8x128xf32>
    %cst_11 = arith.constant dense<0.000000e+00> : vector<8xf32>
    %20 = vector.multi_reduction <add>, %19, %cst_11 [1] : vector<8x128xf32> to vector<8xf32>
    %21 = vector.shape_cast %20 : vector<8xf32> to vector<8x1xf32>
    %cst_12 = arith.constant 1.280000e+02 : f32
    %22 = vector.broadcast %cst_12 : f32 to vector<8x1xf32>
    %23 = arith.divf %21, %22 : vector<8x1xf32>
    %cst_13 = arith.constant 9.99999974E-6 : f32
    %24 = vector.broadcast %cst_13 : f32 to vector<8x1xf32>
    %25 = arith.addf %23, %24 : vector<8x1xf32>
    %26 = math.rsqrt %25 : vector<8x1xf32>
    %27 = vector.broadcast %26 : vector<8x1xf32> to vector<8x128xf32>
    %28 = arith.mulf %18, %27 : vector<8x128xf32>
    %29 = arith.mulf %28, %8 : vector<8x128xf32>
    %30 = arith.addf %29, %11 : vector<8x128xf32>
    %c0_14 = arith.constant 0 : index
    %c0_15 = arith.constant 0 : index
    %31 = vector.load %arg6[%c0_14, %c0_15] : memref<8x256xf32, #tpu.memory_space<vmem>>, vector<8x128xf32>
    tpu.vector_store %arg6[%c0_14, %c0_15], %30 {strides = array<i32>} : memref<8x256xf32, #tpu.memory_space<vmem>>, vector<8x128xf32>,
    %32 = vector.extract_strided_slice %5 {offsets = [0, 128], sizes = [8, 128], strides = [1, 1]} : vector<8x256xf32> to vector<8x128xf32>
    %cst_16 = arith.constant dense<0.000000e+00> : vector<8xf32>
    %33 = vector.multi_reduction <add>, %32, %cst_16 [1] : vector<8x128xf32> to vector<8xf32>
    %34 = vector.shape_cast %33 : vector<8xf32> to vector<8x1xf32>
    %cst_17 = arith.constant 1.280000e+02 : f32
    %35 = vector.broadcast %cst_17 : f32 to vector<8x1xf32>
    %36 = arith.divf %34, %35 : vector<8x1xf32>
    %37 = vector.broadcast %36 : vector<8x1xf32> to vector<8x128xf32>
    %38 = arith.subf %32, %37 : vector<8x128xf32>
    %39 = arith.mulf %38, %38 : vector<8x128xf32>
    %cst_18 = arith.constant dense<0.000000e+00> : vector<8xf32>
    %40 = vector.multi_reduction <add>, %39, %cst_18 [1] : vector<8x128xf32> to vector<8xf32>
    %41 = vector.shape_cast %40 : vector<8xf32> to vector<8x1xf32>
    %cst_19 = arith.constant 1.280000e+02 : f32
    %42 = vector.broadcast %cst_19 : f32 to vector<8x1xf32>
    %43 = arith.divf %41, %42 : vector<8x1xf32>
    %cst_20 = arith.constant 9.99999974E-6 : f32
    %44 = vector.broadcast %cst_20 : f32 to vector<8x1xf32>
    %45 = arith.addf %43, %44 : vector<8x1xf32>
    %46 = math.rsqrt %45 : vector<8x1xf32>
    %47 = vector.broadcast %46 : vector<8x1xf32> to vector<8x128xf32>
    %48 = arith.mulf %38, %47 : vector<8x128xf32>
    %49 = arith.mulf %48, %8 : vector<8x128xf32>
    %50 = arith.addf %49, %11 : vector<8x128xf32>
    %c0_21 = arith.constant 0 : index
    %c128 = arith.constant 128 : index
    %51 = vector.load %arg6[%c0_21, %c128] : memref<8x256xf32, #tpu.memory_space<vmem>>, vector<8x128xf32>
    tpu.vector_store %arg6[%c0_21, %c128], %50 {strides = array<i32>} : memref<8x256xf32, #tpu.memory_space<vmem>>, vector<8x128xf32>,
    return
  }
  func.func @transform_0(%arg0: i32) -> (i32, i32) {
    %c0_i32 = arith.constant 0 : i32
    %c0_i32_0 = arith.constant 0 : i32
    %c0_i32_1 = arith.constant 0 : i32
    return %c0_i32, %c0_i32_0 : i32, i32
  }
  func.func @transform_1(%arg0: i32) -> (i32, i32) {
    %c0_i32 = arith.constant 0 : i32
    %c0_i32_0 = arith.constant 0 : i32
    return %c0_i32, %arg0 : i32, i32
  }
  func.func @transform_2(%arg0: i32) -> (i32, i32) {
    %c0_i32 = arith.constant 0 : i32
    %c0_i32_0 = arith.constant 0 : i32
    return %c0_i32, %arg0 : i32, i32
  }
  func.func @transform_3(%arg0: i32) -> (i32, i32) {
    %c0_i32 = arith.constant 0 : i32
    %c0_i32_0 = arith.constant 0 : i32
    %c0_i32_1 = arith.constant 0 : i32
    return %c0_i32, %c0_i32_0 : i32, i32
  }
  func.func @transform_4(%arg0: i32) -> (i32, i32) {
    %c0_i32 = arith.constant 0 : i32
    %c0_i32_0 = arith.constant 0 : i32
    %c0_i32_1 = arith.constant 0 : i32
    return %c0_i32, %c0_i32_0 : i32, i32
  }
  func.func @transform_5(%arg0: i32) -> (i32, i32) {
    %c0_i32 = arith.constant 0 : i32
    %c0_i32_0 = arith.constant 0 : i32
    return %c0_i32, %arg0 : i32, i32
  }
}

</mosaic_0001>

<bundles_post_ra>
// kernel: tpu_custom_call.1
= control target key start
LH: loop header
LB: loop body
LE: loop exit
PB: predicated region body
PF: predicated region fallthrough
CT: control target
= control target key end

     0   :  { %s1168_s0 = inlined_call_operand.hbm [shape: f32[8,256], index: 0, kind: input, shape index: {}]   ;;  %s1169_s1 = inlined_call_operand.hbm [shape: f32[256,512], index: 1, kind: input, shape index: {}]   ;;  %s1170_s2 = inlined_call_operand.hbm [shape: f32[1,512], index: 2, kind: input, shape index: {}]   ;;  %s1171_s3 = inlined_call_operand.vmem [shape: f32[1,128], index: 3, kind: input, shape index: {}]   ;;  %s1172_s4 = inlined_call_operand.vmem [shape: f32[1,128], index: 4, kind: input, shape index: {}]   ;;  %s1173_s5 = inlined_call_operand.hbm [shape: f32[8,512], index: 5, kind: output, shape index: {}]  }
   0x1   :  { %1174 = sst [smem:[#allocation13_spill]] %s1168_s0 }
   0x2   :  { %1175 = sst [smem:[#allocation14_spill]] %s1169_s1 }
   0x3   :  { %10 = vsyncpa [#allocation3], 0 }
   0x4   :  { %11 = vsyncpa [#allocation6], 0 }
   0x5   :  { %13 = vsyncpa [#allocation6 + $0x1], 0 }
   0x6   :  { %14 = vsyncpa [#allocation4], 0 }
   0x7   :  { %16 = vsyncpa [#allocation4 + $0x1], 0  ;;  %s923_s18 = smov 0   ;;  %s925_s19 = smov 0  }
   0x8   :  { %s927_s20 = smov 0   ;;  %s929_s21 = smov 0  }
   0x9 LB: > { %s944_s22 = sadd.s32 1, %s886_s21   ;;  %s50_s23 = sadd.s32 1, %s882_s20  ;;  %s886_s21 = sphi %s929_s21, %s1189_s21   ;;  %s882_s20 = sphi %s927_s20, %s1188_s20   ;;  %s878_s19 = sphi %s925_s19, %s1187_s19   ;;  %s874_s18 = sphi %s923_s18, %s1186_s18  }
   0xa   : > { %s47_s24 = ssub.s32 %s886_s21, %s944_s22  ;;  %p57_p0 = scmp.ne.s32.totalorder %s882_s20, %s878_s19 }
   0xb   : > { %p48_p1 = scmp.eq.s32.totalorder %s47_s24, 0  ;;  %p58_p2 = scmp.eq.s32.totalorder %s886_s21, 0 }
   0xc   : > { %p678_p4 = scmp.lt.s32.totalorder %s886_s21, 2  ;;  %s199_s26 = sand.u32 1, %s886_s21  }
   0xd   : > { %s955_s25 = scalar_select %p48_p1, %s882_s20, %s50_s23  }
   0xe   : > { %p59_p5 = por %p58_p2, %p57_p0  ;;  %s201_s27 = sand.u32 1, %s882_s20  }
   0xf   : > { %1176 = sst [smem:[#allocation12_spill]] %s955_s25  ;;  %s635_s28 = sshll.u32 %s201_s27, 9 }
  0x10   : > { %s650_s29 = sshll.u32 %s886_s21, 4  ;;  %s1177_s1 = sld [smem:[#allocation14_spill]] }
  0x11   : > { %s203_s9 = scalar_lea.vmem [#allocation5], %s635_s28  ;;  %p970_p6 = pnand %p678_p4, %p59_p5 }
  0x12   : > { %s211_s10 = sshll.u32 %s203_s9, 4  ;;  %s974_s12 = scalar_lea.sflag [#allocation6], %s199_s26  ;;  %s212_s10 = int_to_ptr.vmem [resolvable:$true] %s211_s10 }
  0x13   : > { %p730_p8 = pneg %p970_p6 }
  0x16   : > { %s208_s7 = scalar_lea.hbm %s1177_s1, %s650_s29  ;;  %s733_s17 = scalar_lea.hbm %s1177_s1, 1024 }
  0x17   : > { %s209_s8 = sshll.u32 %s208_s7, 4  ;;  %s210_s8 = int_to_ptr.hbm [resolvable:$true] %s209_s8 }
  0x18   : > { %s726_s13 = sshra.s32 %s210_s8, 4  ;;  %s727_s13 = int_to_ptr.hbm [resolvable:$true] %s726_s13 }
  0x19   : > { %s728_s14 = scalar_lea.hbm %s727_s13, 512  ;;  %p734_p11 = scmp.lt.s32.totalorder %s727_s13, %s1177_s1 }
  0x1a   : > { %p729_p7 = scmp.ne.s32.totalorder %s727_s13, %s728_s14  ;;  %p735_p12 = scmp.lt.s32.totalorder %s733_s17, %s728_s14 }
  0x1c   : > { %p731_p9 = pnand %p730_p8, %p729_p7  ;;  %p736_p13 = por %p735_p12, %p734_p11 }
  0x1e   : > { %p732_p10 = pneg %p731_p9 }
  0x20   : > { %p737_p1 = pnand %p736_p13, %p732_p10 }
  0x22   : > { %740 = shalt.err (!%p737_p1)
}
  0x23   : > { %s888_s26 = smov 512   ;;  %s889_s28 = smov 256  }
  0x24   : > { %s890_s29 = smov 16   ;;  %s991_s30 = sadd.s32 4294967295, %s886_s21  }
  0x25   : > { %669 = dma.hbm_to_vmem [thread:$0]  (!%p970_p6), %s210_s8, 8192, %s212_s10, %s974_s12, %s888_s26, %s889_s28, %s890_s29  }
  0x26   : > { %s631_s6 = sadd.s32 4294967294, %s886_s21   ;;  %p63_p2 = scmp.ne.s32.totalorder %s878_s19, %s874_s18 }
  0x27   : > { %p64_p4 = scmp.eq.s32.totalorder %s991_s30, 0  ;;  %p155_p5 = scmp.eq.s32.totalorder %s991_s30, 1 }
  0x28   : > { %p161_p7 = scmp.eq.s32.totalorder %s631_s6, 1  ;;  %p632_p9 = scmp.ge.s32.totalorder %s886_s21, 1 }
  0x29   : > { %p1001_p10 = por %p64_p4, %p63_p2  ;;  %p1008_p11 = por %p155_p5, %p57_p0 }
  0x2a   : > { %p1012_p12 = por %p161_p7, %p63_p2  ;;  %p168_p13 = scmp.lt.s32.totalorder %s886_s21, 3 }
  0x2b   : > { %s1182_s0 = sld [smem:[#allocation13_spill]]  ;;  %s638_s16 = sshll.u32 %s201_s27, 1 }
  0x2c   : > { %p1020_p1 = pnand %p632_p9, %p168_p13  ;;  %s891_s17 = smov [#allocation2]  }
  0x2d   : > { %s182_s23 = sshll.u32 %s891_s17, 4  ;;  %s639_s24 = sshll.u32 %s886_s21, 1  ;;  %s183_s23 = int_to_ptr.vmem [resolvable:$true] %s182_s23 }
  0x2e   : > { %p662_p0 = pneg %p1020_p1  ;;  %s229_s29 = scalar_lea.hbm %s1170_s2, %s639_s24 }
  0x2f   : > { %s225_s6 = scalar_lea.vmem [#allocation7], %s638_s16  ;;  %s231_s13 = sshll.u32 %s229_s29, 4  ;;  %s232_s13 = int_to_ptr.hbm [resolvable:$true] %s231_s13 }
  0x30   : > { %p663_p2 = pnand %p662_p0, %p64_p4  ;;  %s233_s10 = sshll.u32 %s225_s6, 4  ;;  %s234_s10 = int_to_ptr.vmem [resolvable:$true] %s233_s10 }
  0x31   : > { %s180_s14 = sshll.u32 %s1182_s0, 4  ;;  %s786_s27 = sshra.s32 %s232_s13, 4  ;;  %s181_s14 = int_to_ptr.hbm [resolvable:$true] %s180_s14  ;;  %s787_s27 = int_to_ptr.hbm [resolvable:$true] %s786_s27 }
  0x32   : > { %665 = dma.hbm_to_vmem [thread:$0]  (!%p663_p2), %s181_s14, 256, %s183_s23, [#allocation3]  }
  0x33   : > { %s788_s0 = scalar_lea.hbm %s787_s27, 2  ;;  %s793_s25 = scalar_lea.hbm %s1170_s2, 4 }
  0x34   : > { %p789_p5 = scmp.ne.s32.totalorder %s787_s27, %s788_s0  ;;  %p794_p13 = scmp.lt.s32.totalorder %s787_s27, %s1170_s2 }
  0x35   : > { %p795_p0 = scmp.lt.s32.totalorder %s793_s25, %s788_s0 }
  0x36   : > { %p791_p7 = pnand %p789_p5, %p730_p8 }
  0x37   : > { %p796_p2 = por %p795_p0, %p794_p13 }
  0x38   : > { %p792_p9 = pneg %p791_p7 }
  0x3a   : > { %p797_p3 = pnand %p796_p2, %p792_p9 }
  0x3c   : > { %800 = shalt.err (!%p797_p3)
}
  0x3d   : > { %672 = dma.hbm_to_vmem [thread:$0]  (!%p970_p6), %s232_s13, 32, %s234_s10, %s974_s12  }
  0x3e   : > { %242 = sbr.rel (%p1020_p1) target bundleno = 511 (0x1ff), region = 40 }
  0x43   : > { %861 = dma.done.wait (%p64_p4), [#allocation3], 256  }
  0x44   : > { %863 = vsyncadd (%p64_p4), [#allocation3], 4294967040  ;;  %s249_s0 = sand.u32 1, %s991_s30   ;;  %s1054_s1 = sand.u32 1, %s878_s19  }
  0x45   : > { %s642_s25 = sshll.u32 %s1054_s1, 9  ;;  %s250_s11 = scalar_lea.sflag [#allocation6], %s249_s0 }
  0x46   : > { %s1057_s14 = scalar_lea.vmem [#allocation5], %s642_s25 }
  0x47   : > { %865 = dma.done.wait (%p1001_p10), %s250_s11, 8224  }
  0x48   : > { %867 = vsyncadd (%p1001_p10), %s250_s11, 4294959072  ;;  %v331_v0 = vld [vmem:[%s1057_s14 + $0xf0] sm:$0xff]  ;;  %v329_v1 = vld [vmem:[%s1057_s14 + $0xe0] sm:$0xff]  ;;  %s643_s12 = sshll.u32 %s1054_s1, 1  ;;  %s644_s23 = sshll.u32 %s1054_s1, 4 }
  0x49   : > { %v363_v2 = vld [vmem:[%s1057_s14 + $0x1f0] sm:$0xff]  ;;  %371 = vmatpush.msra.mxu0 %v331_v0  ;;  %v332_v3 = vld [vmem:[%s1057_s14 + $0xf8] sm:$0xff]  ;;  %v361_v4 = vld [vmem:[%s1057_s14 + $0x1e0] sm:$0xff]  ;;  %s263_s7 = scalar_lea.vmem [#allocation7], %s643_s12  ;;  %s651_s6 = sshll.u32 %s991_s30, 4 }
  0x4a   : > { %391 = vmatpush.msra.mxu1 %v363_v2  ;;  %411 = vmatpush.msra.mxu2 %v332_v3  ;;  %v327_v5 = vld [vmem:[%s1057_s14 + $0xd0] sm:$0xff]  ;;  %v330_v6 = vld [vmem:[%s1057_s14 + $0xe8] sm:$0xff]  ;;  %v364_v7 = vld [vmem:[%s1057_s14 + $0x1f8] sm:$0xff]  ;;  %s295_s10 = scalar_lea.vmem [#allocation8], %s644_s23  ;;  %s524_s17 = scalar_lea.hbm %s1173_s5, %s651_s6 }
  0x4b   : > { %372 = vmatpush.msra.mxu0 %v329_v1  ;;  %v359_v8 = vld [vmem:[%s1057_s14 + $0x1d0] sm:$0xff]  ;;  %v328_v9 = vld [vmem:[%s1057_s14 + $0xd8] sm:$0xff]  ;;  %v362_v10 = vld [vmem:[%s1057_s14 + $0x1e8] sm:$0xff]  ;;  %431 = vmatpush.msra.mxu3 %v364_v7  ;;  %s526_s26 = sshll.u32 %s295_s10, 4  ;;  %s528_s24 = sshll.u32 %s524_s17, 4  ;;  %s527_s26 = int_to_ptr.vmem [resolvable:$true] %s526_s26  ;;  %s529_s24 = int_to_ptr.hbm [resolvable:$true] %s528_s24 }
  0x4c   : > { %392 = vmatpush.msra.mxu1 %v361_v4  ;;  %412 = vmatpush.msra.mxu2 %v330_v6  ;;  %v325_v11 = vld [vmem:[%s1057_s14 + $0xc0] sm:$0xff]  ;;  %v326_v13 = vld [vmem:[%s1057_s14 + $0xc8] sm:$0xff]  ;;  %v360_v14 = vld [vmem:[%s1057_s14 + $0x1d8] sm:$0xff]  ;;  %s513_s30 = scalar_lea.sflag [#allocation4], %s1054_s1  ;;  %s830_s0 = sshra.s32 %s529_s24, 4  ;;  %s831_s0 = int_to_ptr.hbm [resolvable:$true] %s830_s0 }
  0x4d   : > { %v357_v12 = vld [vmem:[%s1057_s14 + $0x1c0] sm:$0xff]  ;;  %373 = vmatpush.msra.mxu0 %v327_v5  ;;  %432 = vmatpush.msra.mxu3 %v362_v10  ;;  %v323_v15 = vld [vmem:[%s1057_s14 + $0xb0] sm:$0xff]  ;;  %v324_v17 = vld [vmem:[%s1057_s14 + $0xb8] sm:$0xff]  ;;  %s832_s25 = scalar_lea.hbm %s831_s0, 16  ;;  %s836_s12 = scalar_lea.hbm %s1173_s5, 32 }
  0x4e   : > { %393 = vmatpush.msra.mxu1 %v359_v8  ;;  %413 = vmatpush.msra.mxu2 %v328_v9  ;;  %v355_v16 = vld [vmem:[%s1057_s14 + $0x1b0] sm:$0xff]  ;;  %v358_v18 = vld [vmem:[%s1057_s14 + $0x1c8] sm:$0xff]  ;;  %v321_v19 = vld [vmem:[%s1057_s14 + $0xa0] sm:$0xff]  ;;  %p833_p3 = scmp.ne.s32.totalorder %s831_s0, %s832_s25  ;;  %p837_p4 = scmp.lt.s32.totalorder %s831_s0, %s1173_s5 }
  0x4f   : > { %374 = vmatpush.msra.mxu0 %v325_v11  ;;  %433 = vmatpush.msra.mxu3 %v360_v14  ;;  %v353_v20 = vld [vmem:[%s1057_s14 + $0x1a0] sm:$0xff]  ;;  %v322_v21 = vld [vmem:[%s1057_s14 + $0xa8] sm:$0xff]  ;;  %v356_v22 = vld [vmem:[%s1057_s14 + $0x1b8] sm:$0xff]  ;;  %p838_p10 = scmp.lt.s32.totalorder %s836_s12, %s832_s25 }
  0x50   : > { %394 = vmatpush.msra.mxu1 %v357_v12  ;;  %414 = vmatpush.msra.mxu2 %v326_v13  ;;  %v319_v23 = vld [vmem:[%s1057_s14 + $0x90] sm:$0xff]  ;;  %v320_v25 = vld [vmem:[%s1057_s14 + $0x98] sm:$0xff]  ;;  %v354_v26 = vld [vmem:[%s1057_s14 + $0x1a8] sm:$0xff]  ;;  %v892_v13 = vmov 128.0   ;;  %p834_p6 = pnand %p833_p3, %p1008_p11 }
  0x51   : > { %375 = vmatpush.msra.mxu0 %v323_v15  ;;  %434 = vmatpush.msra.mxu3 %v358_v18  ;;  %v351_v24 = vld [vmem:[%s1057_s14 + $0x190] sm:$0xff]  ;;  %v317_v27 = vld [vmem:[%s1057_s14 + $0x80] sm:$0xff]  ;;  %v318_v29 = vld [vmem:[%s1057_s14 + $0x88] sm:$0xff]  ;;  %720 = vrcp.f32 %v892_v13  ;;  %p839_p1 = por %p838_p10, %p837_p4 }
  0x52   : > { %395 = vmatpush.msra.mxu1 %v355_v16  ;;  %415 = vmatpush.msra.mxu2 %v324_v17  ;;  %v349_v28 = vld [vmem:[%s1057_s14 + $0x180] sm:$0xff]  ;;  %v352_v30 = vld [vmem:[%s1057_s14 + $0x198] sm:$0xff]  ;;  %v315_v31 = vld [vmem:[%s1057_s14 + $0x70] sm:$0xff]  ;;  %p835_p8 = pneg %p834_p6 }
  0x53   : > { %376 = vmatpush.msra.mxu0 %v321_v19  ;;  %435 = vmatpush.msra.mxu3 %v356_v22  ;;  %v347_v32 = vld [vmem:[%s1057_s14 + $0x170] sm:$0xff]  ;;  %v316_v33 = vld [vmem:[%s1057_s14 + $0x78] sm:$0xff]  ;;  %v350_v34 = vld [vmem:[%s1057_s14 + $0x188] sm:$0xff] }
  0x54   : > { %396 = vmatpush.msra.mxu1 %v353_v20  ;;  %416 = vmatpush.msra.mxu2 %v322_v21  ;;  %v313_v35 = vld [vmem:[%s1057_s14 + $0x60] sm:$0xff]  ;;  %v314_v37 = vld [vmem:[%s1057_s14 + $0x68] sm:$0xff]  ;;  %v348_v38 = vld [vmem:[%s1057_s14 + $0x178] sm:$0xff]  ;;  %p840_p5 = pnand %p839_p1, %p835_p8 }
  0x55   : > { %377 = vmatpush.msra.mxu0 %v319_v23  ;;  %436 = vmatpush.msra.mxu3 %v354_v26  ;;  %v345_v36 = vld [vmem:[%s1057_s14 + $0x160] sm:$0xff]  ;;  %v311_v39 = vld [vmem:[%s1057_s14 + $0x50] sm:$0xff]  ;;  %v312_v41 = vld [vmem:[%s1057_s14 + $0x58] sm:$0xff] }
  0x56   : > { %397 = vmatpush.msra.mxu1 %v351_v24  ;;  %417 = vmatpush.msra.mxu2 %v320_v25  ;;  %v343_v40 = vld [vmem:[%s1057_s14 + $0x150] sm:$0xff]  ;;  %v346_v42 = vld [vmem:[%s1057_s14 + $0x168] sm:$0xff]  ;;  %v309_v43 = vld [vmem:[%s1057_s14 + $0x40] sm:$0xff] }
  0x57   : > { %378 = vmatpush.msra.mxu0 %v317_v27  ;;  %437 = vmatpush.msra.mxu3 %v352_v30  ;;  %v341_v44 = vld [vmem:[%s1057_s14 + $0x140] sm:$0xff]  ;;  %v307_v45 = vld [vmem:[%s1057_s14 + $0x30] sm:$0xff]  ;;  %v310_v46 = vld [vmem:[%s1057_s14 + $0x48] sm:$0xff]  ;;  %v721_v14 = vpop.eup %720 }
  0x58   : > { %398 = vmatpush.msra.mxu1 %v349_v28  ;;  %418 = vmatpush.msra.mxu2 %v318_v29  ;;  %v344_v47 = vld [vmem:[%s1057_s14 + $0x158] sm:$0xff]  ;;  %v339_v48 = vld [vmem:[%s1057_s14 + $0x130] sm:$0xff]  ;;  %v342_v50 = vld [vmem:[%s1057_s14 + $0x148] sm:$0xff]  ;;  %v462_v15 = vmul.f32 128.0, %v721_v14  ;;  %vm466_vm0 = vweird.f32 %v721_v14 }
  0x59   : > { %379 = vmatpush.msra.mxu0 %v315_v31  ;;  %438 = vmatpush.msra.mxu3 %v350_v34  ;;  %v308_v49 = vld [vmem:[%s1057_s14 + $0x38] sm:$0xff]  ;;  %v305_v51 = vld [vmem:[%s1057_s14 + $0x20] sm:$0xff]  ;;  %v306_v53 = vld [vmem:[%s1057_s14 + $0x28] sm:$0xff] }
  0x5a   : > { %399 = vmatpush.msra.mxu1 %v347_v32  ;;  %419 = vmatpush.msra.mxu2 %v316_v33  ;;  %v337_v52 = vld [vmem:[%s1057_s14 + $0x120] sm:$0xff]  ;;  %v340_v54 = vld [vmem:[%s1057_s14 + $0x138] sm:$0xff]  ;;  %v303_v55 = vld [vmem:[%s1057_s14 + $0x10] sm:$0xff]  ;;  %v463_v16 = vsub.f32 1.0, %v462_v15 }
  0x5b   : > { %380 = vmatpush.msra.mxu0 %v313_v35  ;;  %439 = vmatpush.msra.mxu3 %v348_v38  ;;  %v335_v56 = vld [vmem:[%s1057_s14 + $0x110] sm:$0xff]  ;;  %v304_v57 = vld [vmem:[%s1057_s14 + $0x18] sm:$0xff]  ;;  %v338_v58 = vld [vmem:[%s1057_s14 + $0x128] sm:$0xff] }
  0x5c   : > { %400 = vmatpush.msra.mxu1 %v345_v36  ;;  %420 = vmatpush.msra.mxu2 %v314_v37  ;;  %v301_v59 = vld [vmem:[%s1057_s14] sm:$0xff]  ;;  %v299_v61 = vld [vmem:[#allocation2] sm:$0xff]  ;;  %v302_v62 = vld [vmem:[%s1057_s14 + $0x8] sm:$0xff]  ;;  %v464_v17 = vmul.f32 %v721_v14, %v463_v16 }
  0x5d   : > { %381 = vmatpush.msra.mxu0 %v311_v39  ;;  %440 = vmatpush.msra.mxu3 %v346_v42  ;;  %v333_v60 = vld [vmem:[%s1057_s14 + $0x100] sm:$0xff]  ;;  %v336_v63 = vld [vmem:[%s1057_s14 + $0x118] sm:$0xff]  ;;  %v334_v1 = vld [vmem:[%s1057_s14 + $0x108] sm:$0xff] }
  0x5e   : > { %401 = vmatpush.msra.mxu1 %v343_v40  ;;  %421 = vmatpush.msra.mxu2 %v312_v41  ;;  %v300_v0 = vld [vmem:[#allocation2 + $0x8] sm:$0xff]  ;;  %v365_v2 = vld [vmem:[%s263_s7] sm:$0x3]  ;;  %v465_v18 = vadd.f32 %v721_v14, %v464_v17  ;;  %v718_v42 = vld [vmem:[%s1171_s3] ss:$0 sm:$0xff] }
  0x5f   : > { %382 = vmatpush.msra.mxu0 %v309_v43  ;;  %441 = vmatpush.msra.mxu3 %v344_v47  ;;  %v367_v3 = vperm.slane %v365_v2, 0  ;;  %v368_v8 = vperm.slane %v365_v2, 1 }
  0x60   : > { %402 = vmatpush.msra.mxu1 %v341_v44  ;;  %422 = vmatpush.msra.mxu2 %v310_v46  ;;  %v467_v19 = vsel %vm466_vm0, %v721_v14, %v465_v18  ;;  %v719_v46 = vld [vmem:[%s1172_s4] ss:$0 sm:$0xff] }
  0x61   : > { %383 = vmatpush.msra.mxu0 %v307_v45  ;;  %442 = vmatpush.msra.mxu3 %v342_v50 }
  0x62   : > { %403 = vmatpush.msra.mxu1 %v339_v48  ;;  %423 = vmatpush.msra.mxu2 %v308_v49 }
  0x63   : > { %384 = vmatpush.msra.mxu0 %v305_v51  ;;  %443 = vmatpush.msra.mxu3 %v340_v54 }
  0x64   : > { %404 = vmatpush.msra.mxu1 %v337_v52  ;;  %424 = vmatpush.msra.mxu2 %v306_v53 }
  0x65   : > { %385 = vmatpush.msra.mxu0 %v303_v55  ;;  %444 = vmatpush.msra.mxu3 %v338_v58 }
  0x66   : > { %405 = vmatpush.msra.mxu1 %v335_v56  ;;  %425 = vmatpush.msra.mxu2 %v304_v57 }
  0x67   : > { %386 = vmatpush.msra.mxu0 %v301_v59  ;;  %445 = vmatpush.msra.mxu3 %v336_v63 }
  0x68   : > { %406 = vmatpush.msra.mxu1 %v333_v60  ;;  %387 = vmatmul.f32.vlgmr.msra.gmra.mxu0 %v299_v61 }
  0x69   : > { %426 = vmatpush.msra.mxu2 %v302_v62  ;;  %407 = vmatmul.f32.vlgmr.msra.gmra.mxu1 %v300_v0 }
  0x6a   : > { %427 = vmatmul.f32.vlgmr.msra.gmra.mxu2 %v299_v61  ;;  %446 = vmatpush.msra.mxu3 %v334_v1 }
  0x6b   : > { %447 = vmatmul.f32.vlgmr.msra.gmra.mxu3 %v300_v0 }
  0xe5   : > { %v388_v4 = vpop.f32.mrf.mxu0 }
  0xe6   : > { %v389_v5 = vadd.f32 %v388_v4, %v367_v3  ;;  %v408_v6 = vpop.f32.mrf.mxu1 }
  0xe8   : > { %v409_v7 = vadd.f32 %v408_v6, %v389_v5 }
  0xea   : > { %459 = vadd.xlane.f32.xlu0 %v409_v7 }
  0xed   : > { %v428_v9 = vpop.f32.mrf.mxu2 }
  0xee   : > { %v429_v10 = vadd.f32 %v428_v9, %v368_v8  ;;  %v448_v11 = vpop.f32.mrf.mxu3 }
  0xf0   : > { %v449_v12 = vadd.f32 %v448_v11, %v429_v10 }
  0xf2   : > { %489 = vadd.xlane.f32.xlu0 %v449_v12 }
 0x15d   : > { %v460_v20 = vpop.xlane.xlu0 %459 }
 0x15e   : > { %v468_v21 = vmul.f32 %v467_v19, %v460_v20 }
 0x160   : > { %v469_v22 = vsub.f32 %v409_v7, %v468_v21 }
 0x162   : > { %v470_v23 = vmul.f32 %v469_v22, %v469_v22 }
 0x164   : > { %471 = vadd.xlane.f32.xlu1 %v470_v23 }
 0x165   : > { %v490_v24 = vpop.xlane.xlu0 %489 }
 0x166   : > { %v491_v25 = vmul.f32 %v490_v24, %v467_v19 }
 0x168   : > { %v492_v26 = vsub.f32 %v449_v12, %v491_v25 }
 0x16a   : > { %v493_v27 = vmul.f32 %v492_v26, %v492_v26 }
 0x16c   : > { %494 = vadd.xlane.f32.xlu1 %v493_v27 }
 0x1d7   : > { %v472_v28 = vpop.xlane.xlu1 %471 }
 0x1d8   : > { %v473_v29 = vmul.f32 %v472_v28, %v467_v19 }
 0x1da   : > { %v474_v30 = vadd.f32 1e-05, %v473_v29 }
 0x1dc   : > { %722 = vrsqrt.f32 %v474_v30  ;;  %vm481_vm2 = vweird.f32 %v474_v30 }
 0x1df   : > { %v495_v31 = vpop.xlane.xlu1 %494 }
 0x1e0   : > { %v496_v32 = vmul.f32 %v495_v31, %v467_v19 }
 0x1e2   : > { %v723_v33 = vpop.eup %722  ;;  %v497_v34 = vadd.f32 1e-05, %v496_v32 }
 0x1e3   : > { %v476_v35 = vmul.f32 %v723_v33, %v474_v30  ;;  %vm482_vm1 = vweird.f32 %v723_v33 }
 0x1e4   : > { %724 = vrsqrt.f32 %v497_v34  ;;  %vm483_vm3 = vmor %vm481_vm2, %vm482_vm1  ;;  %vm504_vm5 = vweird.f32 %v497_v34 }
 0x1e5   : > { %v477_v36 = vmul.f32 %v723_v33, %v476_v35 }
 0x1e7   : > { %v478_v37 = vmul.f32 0.5, %v477_v36 }
 0x1e9   : > { %v479_v38 = vsub.f32 1.5, %v478_v37 }
 0x1ea   : > { %v725_v39 = vpop.eup %724 }
 0x1eb   : > { %v480_v40 = vmul.f32 %v723_v33, %v479_v38  ;;  %v499_v41 = vmul.f32 %v725_v39, %v497_v34  ;;  %vm505_vm4 = vweird.f32 %v725_v39 }
 0x1ec   : > { %vm506_vm6 = vmor %vm504_vm5, %vm505_vm4 }
 0x1ed   : > { %v484_v43 = vsel %vm483_vm3, %v723_v33, %v480_v40  ;;  %v500_v44 = vmul.f32 %v725_v39, %v499_v41 }
 0x1ee   : > { %v485_v45 = vmul.f32 %v484_v43, %v469_v22 }
 0x1ef   : > { %v501_v47 = vmul.f32 0.5, %v500_v44 }
 0x1f0   : > { %v486_v48 = vmul.f32 %v718_v42, %v485_v45 }
 0x1f1   : > { %v502_v49 = vsub.f32 1.5, %v501_v47 }
 0x1f2   : > { %v487_v50 = vadd.f32 %v719_v46, %v486_v48 }
 0x1f3   : > { %v503_v51 = vmul.f32 %v725_v39, %v502_v49 }
 0x1f4   : > { %488 = vst [vmem:[%s295_s10] sm:$0xff] %v487_v50 }
 0x1f5   : > { %v507_v52 = vsel %vm506_vm6, %v725_v39, %v503_v51 }
 0x1f6   : > { %v508_v53 = vmul.f32 %v507_v52, %v492_v26 }
 0x1f8   : > { %v509_v54 = vmul.f32 %v718_v42, %v508_v53 }
 0x1fa   : > { %v510_v55 = vadd.f32 %v719_v46, %v509_v54 }
 0x1fc   : > { %511 = vst [vmem:[%s295_s10 + $0x8] sm:$0xff] %v510_v55 }
 0x1fd   : > { %843 = shalt.err (!%p840_p5)
}
 0x1fe   : > { %660 = dma.vmem_to_hbm [thread:$0]  (%p1008_p11), %s527_s26, 256, %s529_s24, %s513_s30  }
 0x1ff PF: > { %s540_s1 = sand.u32 1, %s874_s18   ;;  %p1184_p7 = scmp.ge.s32.totalorder %s886_s21, 2 }
 0x200   : > { %s541_s16 = scalar_lea.sflag [#allocation4], %s540_s1 }
 0x201   : > { %p674_p9 = pnand %p1184_p7, %p1012_p12 }
 0x203   : > { %p675_p13 = pneg %p674_p9 }
 0x205   : > { %869 = dma.done.wait (%p675_p13), %s541_s16, 256  }
 0x206   : > { %871 = vsyncadd (%p675_p13), %s541_s16, 4294967040  ;;  %s1185_s23 = sld [smem:[#allocation12_spill]]  ;;  %p19_p0 = scmp.ge.s32.totalorder %s944_s22, 4  }
 0x207   : > { %s1186_s18 = smov %s878_s19  ;;  %s1187_s19 = smov %s882_s20 }
 0x208   : > { %s1189_s21 = smov %s944_s22  ;;  %21 = sbr.rel (!%p19_p0) target bundleno = 9 (0x9), region = 101 }
 0x20c   : > { %s1188_s20 = smov %s1185_s23 }
 0x20d   :  { %547 = vsyncpa [#allocation3], 1 }
 0x20e   :  { %549 = vsyncpa [#allocation3 + $0x1], 1 }
 0x20f   :  { %550 = vsyncpa [#allocation6], 1 }
 0x210   :  { %552 = vsyncpa [#allocation6 + $0x1], 1 }
 0x211   :  { %553 = vsyncpa [#allocation4], 1 }
 0x212   :  { %555 = vsyncpa [#allocation4 + $0x1], 1 }

</bundles_post_ra>
